<compile_context>
chip_gen: v7x
topology: tpu7x:2x2x1
jax: 0.10.0
libtpu: 0.0.40
codegen_flags: <defaults>
</compile_context>

<pallas_src>
import jax
import jax.numpy as jnp
from jax.experimental import pallas as pl
from jax.experimental.pallas import tpu as pltpu


def _hbm_copy_kernel(x_hbm, o_hbm, sem):
    # Direct HBM -> HBM DMA: issue one descriptor for the whole (contiguous,
    # identically-laid-out) array and block on its completion semaphore.
    cp = pltpu.make_async_copy(x_hbm, o_hbm, sem)
    cp.start()
    cp.wait()


def _pallas_identity_copy(x):
    """Materialize a fresh copy of x with a single HBM->HBM DMA."""
    return pl.pallas_call(
        _hbm_copy_kernel,
        out_shape=jax.ShapeDtypeStruct(x.shape, x.dtype),
        in_specs=[pl.BlockSpec(memory_space=pl.ANY)],   # raw HBM ref, no auto-DMA
        out_specs=pl.BlockSpec(memory_space=pl.ANY),    # raw HBM ref, no auto-DMA
        scratch_shapes=[pltpu.SemaphoreType.DMA],
    )(x)


def random_recurrent_plurality_agent_forward(
    x, recurrent_cell, *, materialize=False, min_kernel_bytes=256 * 1024
):
    """Pallas equivalent of RandomRecurrentPluralityAgent.forward.

    Default (materialize=False): zero-cost pass-through, exactly matching the
    PyTorch semantics (no parameters, no math). With materialize=True, `x` is
    copied into a fresh buffer; arrays below `min_kernel_bytes` use a plain
    XLA copy (kernel launch overhead dominates), larger arrays use the
    HBM->HBM DMA Pallas kernel. The recurrent cell is always passed through.
    """
    if not materialize:
        return x, recurrent_cell
    nbytes = x.size * x.dtype.itemsize
    if nbytes < min_kernel_bytes:
        return jnp.copy(x), recurrent_cell
    return _pallas_identity_copy(x), recurrent_cell


if __name__ == "__main__":
    key = jax.random.PRNGKey(0)
    kx, kh = jax.random.split(key)

    # Small shapes consistent with a recurrent agent forward:
    #   observation x in NCHW, recurrent cell as (batch, hidden).
    x = jax.random.normal(kx, (2, 4, 16, 16), dtype=jnp.float32)
    recurrent_cell = jax.random.normal(kh, (2, 32), dtype=jnp.float32)

    # Zero-kernel default path (the real "optimized" forward).
    x_pass, h_pass = random_recurrent_plurality_agent_forward(x, recurrent_cell)
    assert x_pass is x and h_pass is recurrent_cell

    # Force the HBM->HBM DMA copy kernel once on the small example
    # (min_kernel_bytes=0 overrides the tiny-array gate for the demo).
    x_out, h_out = random_recurrent_plurality_agent_forward(
        x, recurrent_cell, materialize=True, min_kernel_bytes=0
    )
    jax.block_until_ready((x_out, h_out))

    # Verify exact pass-through semantics (shapes, dtypes, values).
    assert x_out.shape == x.shape and x_out.dtype == x.dtype
    assert h_out.shape == recurrent_cell.shape and h_out.dtype == recurrent_cell.dtype
    assert bool(jnp.array_equal(x_out, x))
    assert bool(jnp.array_equal(h_out, recurrent_cell))

    print("KERNEL_OK")
</pallas_src>

<mosaic_0001>
module attributes {stable_mosaic.version = 11 : i64} {
  func.func @_hbm_copy_kernel(%arg0: memref<2x4x16x16xf32, #tpu.memory_space<any>>, %arg1: memref<2x4x16x16xf32, #tpu.memory_space<any>>, %arg2: memref<!tpu.dma_semaphore, #tpu.memory_space<semaphore_mem>>) attributes {dimension_semantics = [], scalar_prefetch = 0 : i64, scratch_operands = 1 : i64, tpu.core_type = #tpu.core_type<tc>} {
    tpu.enqueue_dma source(%arg0 : memref<2x4x16x16xf32, #tpu.memory_space<any>>) target(%arg1 : memref<2x4x16x16xf32, #tpu.memory_space<any>>) target_semaphore(%arg2 : memref<!tpu.dma_semaphore, #tpu.memory_space<semaphore_mem>>)
    tpu.wait_dma2 semaphore(%arg2 : memref<!tpu.dma_semaphore, #tpu.memory_space<semaphore_mem>>) src(%arg0 : memref<2x4x16x16xf32, #tpu.memory_space<any>>) dst(%arg1 : memref<2x4x16x16xf32, #tpu.memory_space<any>>)
    return
  }
}

</mosaic_0001>

<bundles_post_ra>
// kernel: tpu_custom_call.1
= control target key start
LH: loop header
LB: loop body
LE: loop exit
PB: predicated region body
PF: predicated region fallthrough
CT: control target
= control target key end

     0   :  { %s36_s6 = smov [#allocation2]   ;;  %s37_s7 = smov [#allocation3]   ;;  %s55_s0 = inlined_call_operand.hbm [shape: f32[2,4,16,16], index: 0, kind: input, shape index: {}]   ;;  %s56_s1 = inlined_call_operand.hbm [shape: f32[2,4,16,16], index: 1, kind: output, shape index: {}]  }
   0x1   :  { %s38_s8 = smov 0  }
   0x2   :  { %18 = dma.general %s55_s0, 2048, %s56_s1, %s36_s6, %s37_s7, [#allocation4], %s38_s8, 0  }
   0x3   :  { %34 = dma.done.wait [#allocation2], 2048 }
   0x4   :  { %35 = vsyncadd [#allocation2], 4294965248 }
   0x5   :  { %24 = vsyncmov [#allocation2] }
   0x8   :  { %s25_s13 = vpop.sfrf %24 }
   0x9   :  { %p30_p0 = scmp.ne.s32.totalorder %s25_s13, 0 }
   0xb   :  { %29 = shalt.err (%p30_p0)  }

</bundles_post_ra>
